<compile_context>
chip_gen: v5e
topology: v5e:2x2
jax: 0.10.0
libtpu: 0.0.40
codegen_flags: <defaults>
</compile_context>

<pallas_src>
import functools

import jax
import jax.numpy as jnp
from jax.experimental import pallas as pl
from jax.experimental.pallas import tpu as pltpu


def _round_up(x, m):
    return (x + m - 1) // m * m


def _fused_conv_act_kernel(x_ref, w_ref, b_ref, o_ref, slab_ref, *,
                           K, C, dil, Wp, Lq_pad, act):
    """One batch element.

    x_ref:    (C, Lx_pad)        bf16  flattened reflect-padded image (+ zero tail)
    w_ref:    (O, K*K*C)         bf16  fused weight matrix
    b_ref:    (O, 1)             f32   bias (broadcast over lanes)
    o_ref:    (O, Lq_pad)        bf16  dense stride-1 output (lane-padded)
    slab_ref: (K*K*C, Lq_pad)    bf16  VMEM scratch: stacked shifted slabs
    """
    # Stage the K*K shifted views of the flat image; tap t occupies rows
    # [t*C, (t+1)*C).  All slices are static.
    for kh in range(K):
        for kw in range(K):
            t = kh * K + kw
            off = kh * dil * Wp + kw * dil            # static flat-space shift
            slab_ref[pl.ds(t * C, C), :] = x_ref[:, pl.ds(off, Lq_pad)]

    # Single MXU contraction over K*K*C, f32 accumulation.
    acc = jnp.dot(w_ref[...], slab_ref[...], preferred_element_type=jnp.float32)
    acc = acc + b_ref[...]                            # (O,1) broadcasts over lanes
    out = jax.nn.sigmoid(acc) if act == "sigmoid" else jnp.tanh(acc)
    o_ref[...] = out.astype(o_ref.dtype)


def dis_pred_conv_block(x_nchw, weight, bias, *, kernel_size, stride,
                        dilation, adv_type, out_dtype=jnp.bfloat16):
    """ReflectionPad2d(pad) -> Conv2d(..., padding=0) -> Sigmoid/Tanh (NCHW)."""
    if adv_type in ("ls", "rals"):
        act = "sigmoid"
    elif adv_type in ("hinge", "rahinge"):
        act = "tanh"
    else:
        raise NotImplementedError(
            "Adversarial loss [{}] is not found.".format(adv_type))

    N, C, H, W = x_nchw.shape
    O = weight.shape[0]
    K, d, s = kernel_size, dilation, stride
    pad = (K + (K - 1) * (d - 1) - 1) // 2
    assert pad < H and pad < W, "reflection pad must be < spatial extent"

    # ---- glue: reflection pad + flatten (pure layout, stays in XLA) --------
    # TODO(synk): pull the reflection pad + bf16 cast into the kernel (border
    # row/col copies in VMEM) to remove the extra padded-image HBM round-trip.
    x_pad = jnp.pad(x_nchw.astype(jnp.bfloat16),
                    ((0, 0), (0, 0), (pad, pad), (pad, pad)), mode="reflect")
    Hp, Wp = H + 2 * pad, W + 2 * pad
    Ho1, Wo1 = Hp - d * (K - 1), Wp - d * (K - 1)     # dense (stride-1) output
    Ho, Wo = (Ho1 - 1) // s + 1, (Wo1 - 1) // s + 1   # strided output

    # Garbage-column / zero-tail trick validity (cropped by the wrapper).
    assert Ho <= Ho1 and Wo <= Wo1
    assert (Ho - 1) * s <= Ho1 - 1 and (Wo - 1) * s <= Wo1 - 1

    tail = (K - 1) * d * (Wp + 1)          # max static tap shift in flat space
    Lq = Ho1 * Wp                          # valid dense-output length per image
    Lq_pad = _round_up(Lq, 128)            # lane-dense output (unmasked stores)
    Lx_pad = _round_up(max(Hp * Wp, Lq_pad + tail), 128)

    x_flat = x_pad.reshape(N, C, Hp * Wp)
    x_flat = jnp.pad(x_flat, ((0, 0), (0, 0), (0, Lx_pad - Hp * Wp)))

    # (O, C, K, K) -> (O, K, K, C) -> (O, K*K*C): column (kh*K+kw)*C + c.
    w_fused = jnp.transpose(weight, (0, 2, 3, 1)).reshape(O, K * K * C)
    w_fused = w_fused.astype(jnp.bfloat16)
    b_k = bias.reshape(O, 1).astype(jnp.float32)

    # ---- VMEM budget, derived per generation --------------------------------
    try:
        vmem_cap = int(pltpu.get_tpu_info().vmem_capacity_bytes)
    except Exception:                       # pragma: no cover - conservative fallback
        vmem_cap = 64 * 1024 * 1024         # v7x per-TC size (smallest)
    vmem_limit = min(vmem_cap * 3 // 4, 96 * 1024 * 1024)

    vmem_need = (2 * C * Lx_pad * 2          # double-buffered input block (bf16)
                 + 2 * O * Lq_pad * 2        # double-buffered output block (bf16)
                 + 2 * K * K * O * C * 2     # weights (tiny)
                 + 2 * O * 4                 # bias
                 + K * K * C * Lq_pad * 2)   # slab scratch (bf16)
    # TODO(synk): for very large feature maps, row-tile the image with a manual
    # halo DMA instead of holding the whole padded image in VMEM.
    assert vmem_need < vmem_limit, "padded image too large for whole-image VMEM path"

    kernel = functools.partial(_fused_conv_act_kernel,
                               K=K, C=C, dil=d, Wp=Wp, Lq_pad=Lq_pad, act=act)

    out_flat = pl.pallas_call(
        kernel,
        out_shape=jax.ShapeDtypeStruct((N, O, Lq_pad), out_dtype),
        grid_spec=pltpu.PrefetchScalarGridSpec(
            num_scalar_prefetch=0,
            grid=(N,),
            in_specs=[
                pl.BlockSpec((None, C, Lx_pad), lambda n: (n, 0, 0)),
                # NOTE: weights/bias are grid-invariant; single-buffering them
                # would save a negligible amount of VMEM.
                pl.BlockSpec((O, K * K * C), lambda n: (0, 0)),
                pl.BlockSpec((O, 1), lambda n: (0, 0)),
            ],
            out_specs=pl.BlockSpec((None, O, Lq_pad), lambda n: (n, 0, 0)),
            scratch_shapes=[pltpu.VMEM((K * K * C, Lq_pad), jnp.bfloat16)],
        ),
        compiler_params=pltpu.CompilerParams(
            dimension_semantics=("parallel",),
            vmem_limit_bytes=vmem_limit),
        cost_estimate=pl.CostEstimate(
            flops=2 * N * O * K * K * C * Lq_pad,
            transcendentals=N * O * Lq_pad,
            bytes_accessed=N * C * Lx_pad * 2 + K * K * O * C * 2 + O * 4
                           + N * O * Lq_pad * 2),
    )(x_flat, w_fused, b_k)

    # Crop lane padding + wrap-around ("garbage") columns; already NCHW.
    y1 = out_flat[:, :, :Lq].reshape(N, O, Ho1, Wp)
    if s == 1:
        return y1[:, :, :, :Wo]
    # TODO(synk): stride>1 computes the dense stride-1 map and subsamples
    # (~s^2 redundant MXU work); a strided-store kernel would avoid it.
    return y1[:, :, ::s, ::s][:, :, :Ho, :Wo]


def _reference(x_nchw, weight, bias, *, kernel_size, stride, dilation, adv_type):
    K, d, s = kernel_size, dilation, stride
    pad = (K + (K - 1) * (d - 1) - 1) // 2
    xp = jnp.pad(x_nchw, ((0, 0), (0, 0), (pad, pad), (pad, pad)),
                 mode="reflect")
    y = jax.lax.conv_general_dilated(
        xp, weight, window_strides=(s, s), padding="VALID",
        rhs_dilation=(d, d), dimension_numbers=("NCHW", "OIHW", "NCHW"))
    y = y + bias.reshape(1, -1, 1, 1)
    return jax.nn.sigmoid(y) if adv_type in ("ls", "rals") else jnp.tanh(y)


if __name__ == "__main__":
    in_channels, out_channels = 4, 8
    kernel_size, stride, dilation = 3, 1, 1
    use_bias = True

    key = jax.random.PRNGKey(0)
    kx, kw, kb = jax.random.split(key, 3)

    x = jax.random.normal(kx, (2, in_channels, 16, 16), dtype=jnp.float32)
    weight = 0.1 * jax.random.normal(
        kw, (out_channels, in_channels, kernel_size, kernel_size),
        dtype=jnp.float32)
    bias = 0.1 * jax.random.normal(kb, (out_channels,), dtype=jnp.float32)
    if not use_bias:
        bias = jnp.zeros((out_channels,), jnp.float32)

    # bf16 streamed operands + bf16 output (deliberate precision tradeoff for a
    # discriminator head) -> relaxed tolerance vs the f32 reference.
    for adv_type in ("ls", "hinge"):   # exercises the sigmoid and tanh branches
        out = dis_pred_conv_block(
            x, weight, bias, kernel_size=kernel_size, stride=stride,
            dilation=dilation, adv_type=adv_type)
        out = jax.block_until_ready(out)

        ref = _reference(
            x, weight, bias, kernel_size=kernel_size, stride=stride,
            dilation=dilation, adv_type=adv_type)
        ref = jax.block_until_ready(ref)

        assert out.shape == ref.shape == (2, out_channels, 16, 16), out.shape
        assert jnp.allclose(out.astype(jnp.float32), ref,
                            rtol=2e-2, atol=2e-2), (
            "mismatch vs reference conv for adv_type={}".format(adv_type))

    print("KERNEL_OK")
</pallas_src>

<mosaic_0001>
module attributes {stable_mosaic.version = 11 : i64} {
  func.func @_fused_conv_act_kernel(%arg0: i32, %arg1: memref<1x4x512xbf16, #tpu.memory_space<vmem>>, %arg2: memref<8x36xbf16, #tpu.memory_space<vmem>>, %arg3: memref<8x1xf32, #tpu.memory_space<vmem>>, %arg4: memref<1x8x384xbf16, #tpu.memory_space<vmem>>, %arg5: memref<36x384xbf16, #tpu.memory_space<vmem>>) attributes {dimension_semantics = [#tpu.dimension_semantics<parallel>], iteration_bounds = array<i64: 2>, scalar_prefetch = 0 : i64, scratch_operands = 1 : i64, tpu.core_type = #tpu.core_type<tc>, window_params = [{transform_indices = @transform_0, window_bounds = array<i64: 1, 4, 512>}, {pipeline_mode = #tpu.pipeline_mode<synchronous>, transform_indices = @transform_1, window_bounds = array<i64: 8, 36>}, {pipeline_mode = #tpu.pipeline_mode<synchronous>, transform_indices = @transform_2, window_bounds = array<i64: 8, 1>}, {transform_indices = @transform_3, window_bounds = array<i64: 1, 8, 384>}]} {
    %c0 = arith.constant 0 : index
    %c0_0 = arith.constant 0 : index
    %c0_1 = arith.constant 0 : index
    %0 = vector.load %arg1[%c0, %c0_0, %c0_1] : memref<1x4x512xbf16, #tpu.memory_space<vmem>>, vector<1x4x384xbf16>
    %1 = vector.shape_cast %0 : vector<1x4x384xbf16> to vector<4x384xbf16>
    %c0_2 = arith.constant 0 : index
    %c0_3 = arith.constant 0 : index
    %2 = vector.load %arg5[%c0_2, %c0_3] : memref<36x384xbf16, #tpu.memory_space<vmem>>, vector<4x384xbf16>
    tpu.vector_store %arg5[%c0_2, %c0_3], %1 {strides = array<i32>} : memref<36x384xbf16, #tpu.memory_space<vmem>>, vector<4x384xbf16>,
    %c0_4 = arith.constant 0 : index
    %c0_5 = arith.constant 0 : index
    %c1 = arith.constant 1 : index
    %3 = vector.load %arg1[%c0_4, %c0_5, %c1] : memref<1x4x512xbf16, #tpu.memory_space<vmem>>, vector<1x4x384xbf16>
    %4 = vector.shape_cast %3 : vector<1x4x384xbf16> to vector<4x384xbf16>
    %c4 = arith.constant 4 : index
    %c0_6 = arith.constant 0 : index
    %5 = vector.load %arg5[%c4, %c0_6] : memref<36x384xbf16, #tpu.memory_space<vmem>>, vector<4x384xbf16>
    tpu.vector_store %arg5[%c4, %c0_6], %4 {strides = array<i32>} : memref<36x384xbf16, #tpu.memory_space<vmem>>, vector<4x384xbf16>,
    %c0_7 = arith.constant 0 : index
    %c0_8 = arith.constant 0 : index
    %c2 = arith.constant 2 : index
    %6 = vector.load %arg1[%c0_7, %c0_8, %c2] : memref<1x4x512xbf16, #tpu.memory_space<vmem>>, vector<1x4x384xbf16>
    %7 = vector.shape_cast %6 : vector<1x4x384xbf16> to vector<4x384xbf16>
    %c8 = arith.constant 8 : index
    %c0_9 = arith.constant 0 : index
    %8 = vector.load %arg5[%c8, %c0_9] : memref<36x384xbf16, #tpu.memory_space<vmem>>, vector<4x384xbf16>
    tpu.vector_store %arg5[%c8, %c0_9], %7 {strides = array<i32>} : memref<36x384xbf16, #tpu.memory_space<vmem>>, vector<4x384xbf16>,
    %c0_10 = arith.constant 0 : index
    %c0_11 = arith.constant 0 : index
    %c18 = arith.constant 18 : index
    %9 = vector.load %arg1[%c0_10, %c0_11, %c18] : memref<1x4x512xbf16, #tpu.memory_space<vmem>>, vector<1x4x384xbf16>
    %10 = vector.shape_cast %9 : vector<1x4x384xbf16> to vector<4x384xbf16>
    %c12 = arith.constant 12 : index
    %c0_12 = arith.constant 0 : index
    %11 = vector.load %arg5[%c12, %c0_12] : memref<36x384xbf16, #tpu.memory_space<vmem>>, vector<4x384xbf16>
    tpu.vector_store %arg5[%c12, %c0_12], %10 {strides = array<i32>} : memref<36x384xbf16, #tpu.memory_space<vmem>>, vector<4x384xbf16>,
    %c0_13 = arith.constant 0 : index
    %c0_14 = arith.constant 0 : index
    %c19 = arith.constant 19 : index
    %12 = vector.load %arg1[%c0_13, %c0_14, %c19] : memref<1x4x512xbf16, #tpu.memory_space<vmem>>, vector<1x4x384xbf16>
    %13 = vector.shape_cast %12 : vector<1x4x384xbf16> to vector<4x384xbf16>
    %c16 = arith.constant 16 : index
    %c0_15 = arith.constant 0 : index
    %14 = vector.load %arg5[%c16, %c0_15] : memref<36x384xbf16, #tpu.memory_space<vmem>>, vector<4x384xbf16>
    tpu.vector_store %arg5[%c16, %c0_15], %13 {strides = array<i32>} : memref<36x384xbf16, #tpu.memory_space<vmem>>, vector<4x384xbf16>,
    %c0_16 = arith.constant 0 : index
    %c0_17 = arith.constant 0 : index
    %c20 = arith.constant 20 : index
    %15 = vector.load %arg1[%c0_16, %c0_17, %c20] : memref<1x4x512xbf16, #tpu.memory_space<vmem>>, vector<1x4x384xbf16>
    %16 = vector.shape_cast %15 : vector<1x4x384xbf16> to vector<4x384xbf16>
    %c20_18 = arith.constant 20 : index
    %c0_19 = arith.constant 0 : index
    %17 = vector.load %arg5[%c20_18, %c0_19] : memref<36x384xbf16, #tpu.memory_space<vmem>>, vector<4x384xbf16>
    tpu.vector_store %arg5[%c20_18, %c0_19], %16 {strides = array<i32>} : memref<36x384xbf16, #tpu.memory_space<vmem>>, vector<4x384xbf16>,
    %c0_20 = arith.constant 0 : index
    %c0_21 = arith.constant 0 : index
    %c36 = arith.constant 36 : index
    %18 = vector.load %arg1[%c0_20, %c0_21, %c36] : memref<1x4x512xbf16, #tpu.memory_space<vmem>>, vector<1x4x384xbf16>
    %19 = vector.shape_cast %18 : vector<1x4x384xbf16> to vector<4x384xbf16>
    %c24 = arith.constant 24 : index
    %c0_22 = arith.constant 0 : index
    %20 = vector.load %arg5[%c24, %c0_22] : memref<36x384xbf16, #tpu.memory_space<vmem>>, vector<4x384xbf16>
    tpu.vector_store %arg5[%c24, %c0_22], %19 {strides = array<i32>} : memref<36x384xbf16, #tpu.memory_space<vmem>>, vector<4x384xbf16>,
    %c0_23 = arith.constant 0 : index
    %c0_24 = arith.constant 0 : index
    %c37 = arith.constant 37 : index
    %21 = vector.load %arg1[%c0_23, %c0_24, %c37] : memref<1x4x512xbf16, #tpu.memory_space<vmem>>, vector<1x4x384xbf16>
    %22 = vector.shape_cast %21 : vector<1x4x384xbf16> to vector<4x384xbf16>
    %c28 = arith.constant 28 : index
    %c0_25 = arith.constant 0 : index
    %23 = vector.load %arg5[%c28, %c0_25] : memref<36x384xbf16, #tpu.memory_space<vmem>>, vector<4x384xbf16>
    tpu.vector_store %arg5[%c28, %c0_25], %22 {strides = array<i32>} : memref<36x384xbf16, #tpu.memory_space<vmem>>, vector<4x384xbf16>,
    %c0_26 = arith.constant 0 : index
    %c0_27 = arith.constant 0 : index
    %c38 = arith.constant 38 : index
    %24 = vector.load %arg1[%c0_26, %c0_27, %c38] : memref<1x4x512xbf16, #tpu.memory_space<vmem>>, vector<1x4x384xbf16>
    %25 = vector.shape_cast %24 : vector<1x4x384xbf16> to vector<4x384xbf16>
    %c32 = arith.constant 32 : index
    %c0_28 = arith.constant 0 : index
    %26 = vector.load %arg5[%c32, %c0_28] : memref<36x384xbf16, #tpu.memory_space<vmem>>, vector<4x384xbf16>
    tpu.vector_store %arg5[%c32, %c0_28], %25 {strides = array<i32>} : memref<36x384xbf16, #tpu.memory_space<vmem>>, vector<4x384xbf16>,
    %c0_29 = arith.constant 0 : index
    %c0_30 = arith.constant 0 : index
    %27 = vector.load %arg2[%c0_29, %c0_30] : memref<8x36xbf16, #tpu.memory_space<vmem>>, vector<8x36xbf16>
    %c0_31 = arith.constant 0 : index
    %c0_32 = arith.constant 0 : index
    %28 = vector.load %arg5[%c0_31, %c0_32] : memref<36x384xbf16, #tpu.memory_space<vmem>>, vector<36x384xbf16>
    %cst = arith.constant dense<0.000000e+00> : vector<8x384xf32>
    %29 = tpu.matmul %27, %28, %cst {dimension_numbers = #tpu.dot_dimension_numbers<[1], [0], [0], [1], [0, 0, 1, 1], [], []>} : vector<8x36xbf16>, vector<36x384xbf16>, vector<8x384xf32> -> vector<8x384xf32>
    %c0_33 = arith.constant 0 : index
    %c0_34 = arith.constant 0 : index
    %30 = vector.load %arg3[%c0_33, %c0_34] : memref<8x1xf32, #tpu.memory_space<vmem>>, vector<8x1xf32>
    %31 = vector.broadcast %30 : vector<8x1xf32> to vector<8x384xf32>
    %32 = arith.addf %29, %31 : vector<8x384xf32>
    %33 = arith.negf %32 : vector<8x384xf32>
    %34 = math.exp %33 : vector<8x384xf32>
    %cst_35 = arith.constant 1.000000e+00 : f32
    %35 = vector.broadcast %cst_35 : f32 to vector<8x384xf32>
    %36 = arith.addf %35, %34 : vector<8x384xf32>
    %37 = arith.divf %35, %36 : vector<8x384xf32>
    %38 = arith.truncf %37 : vector<8x384xf32> to vector<8x384xbf16>
    %c0_36 = arith.constant 0 : index
    %c0_37 = arith.constant 0 : index
    %c0_38 = arith.constant 0 : index
    %39 = vector.load %arg4[%c0_36, %c0_37, %c0_38] : memref<1x8x384xbf16, #tpu.memory_space<vmem>>, vector<1x8x384xbf16>
    %40 = vector.shape_cast %39 : vector<1x8x384xbf16> to vector<8x384xbf16>
    %41 = vector.shape_cast %38 : vector<8x384xbf16> to vector<1x8x384xbf16>
    tpu.vector_store %arg4[%c0_36, %c0_37, %c0_38], %41 {strides = array<i32>} : memref<1x8x384xbf16, #tpu.memory_space<vmem>>, vector<1x8x384xbf16>,
    return
  }
  func.func @transform_0(%arg0: i32) -> (i32, i32, i32) {
    %c0_i32 = arith.constant 0 : i32
    %c0_i32_0 = arith.constant 0 : i32
    %c0_i32_1 = arith.constant 0 : i32
    return %arg0, %c0_i32, %c0_i32_0 : i32, i32, i32
  }
  func.func @transform_1(%arg0: i32) -> (i32, i32) {
    %c0_i32 = arith.constant 0 : i32
    %c0_i32_0 = arith.constant 0 : i32
    %c0_i32_1 = arith.constant 0 : i32
    return %c0_i32, %c0_i32_0 : i32, i32
  }
  func.func @transform_2(%arg0: i32) -> (i32, i32) {
    %c0_i32 = arith.constant 0 : i32
    %c0_i32_0 = arith.constant 0 : i32
    %c0_i32_1 = arith.constant 0 : i32
    return %c0_i32, %c0_i32_0 : i32, i32
  }
  func.func @transform_3(%arg0: i32) -> (i32, i32, i32) {
    %c0_i32 = arith.constant 0 : i32
    %c0_i32_0 = arith.constant 0 : i32
    %c0_i32_1 = arith.constant 0 : i32
    return %arg0, %c0_i32, %c0_i32_0 : i32, i32, i32
  }
}

</mosaic_0001>

<bundles_post_ra>
// kernel: tpu_custom_call.1
= control target key start
LH: loop header
LB: loop body
LE: loop exit
PB: predicated region body
PF: predicated region fallthrough
CT: control target
= control target key end

     0   :  { %8 = vsyncpa [#allocation4], 0  ;;  %s1056_s0 = inlined_call_operand.hbm [shape: bf16[2,4,512], index: 0, kind: input, shape index: {}]   ;;  %s1057_s1 = inlined_call_operand.vmem [shape: bf16[8,36], index: 1, kind: input, shape index: {}]   ;;  %s1058_s2 = inlined_call_operand.vmem [shape: f32[8,1], index: 2, kind: input, shape index: {}]   ;;  %s1059_s3 = inlined_call_operand.hbm [shape: bf16[2,8,384], index: 3, kind: output, shape index: {}]  }
   0x1   :  { %10 = vsyncpa [#allocation4 + $0x1], 0 }
   0x2   :  { %11 = vsyncpa [#allocation5], 0 }
   0x3   :  { %13 = vsyncpa [#allocation5 + $0x1], 0  ;;  %s876_s12 = smov 0   ;;  %s878_s13 = smov 0  }
   0x4   :  { %s880_s14 = smov 0   ;;  %s882_s15 = smov 0  }
   0x5 LB: > { %s897_s16 = sadd.s32 4294967295, %s845_s15   ;;  %s630_s17 = sadd.s32 4294967294, %s845_s15   ;;  %s845_s15 = sphi %s882_s15, %s1069_s15   ;;  %s841_s14 = sphi %s880_s14, %s1068_s14   ;;  %s837_s13 = sphi %s878_s13, %s1067_s13   ;;  %s833_s12 = sphi %s876_s12, %s1066_s12  }
   0x6   : > { %s901_s18 = sadd.s32 1, %s845_s15   ;;  %s26_s19 = sadd.s32 1, %s841_s14 }
   0x7   : > { %s23_s20 = ssub.s32 %s845_s15, %s901_s18  ;;  %p33_p0 = scmp.ne.s32.totalorder %s841_s14, %s837_s13 }
   0x8   : > { %p24_p1 = scmp.eq.s32.totalorder %s23_s20, 0  ;;  %p34_p2 = scmp.eq.s32.totalorder %s845_s15, 0 }
   0x9   : > { %p39_p3 = scmp.ne.s32.totalorder %s837_s13, %s833_s12  ;;  %p40_p4 = scmp.eq.s32.totalorder %s897_s16, 0 }
   0xa   : > { %s913_s21 = scalar_select %p24_p1, %s841_s14, %s26_s19  }
   0xb   : > { %p915_p5 = por %p34_p2, %p33_p0  ;;  %p919_p6 = por %p40_p4, %p39_p3 }
   0xc   : > { %p105_p7 = scmp.eq.s32.totalorder %s897_s16, 1  ;;  %p111_p8 = scmp.eq.s32.totalorder %s630_s17, 1 }
   0xd   : > { %p692_p10 = scmp.lt.s32.totalorder %s845_s15, 2  ;;  %s137_s26 = sand.u32 1, %s841_s14  }
   0xe   : > { %p926_p11 = por %p105_p7, %p33_p0  ;;  %p930_p12 = por %p111_p8, %p39_p3 }
   0xf   : > { %s671_s27 = sshll.u32 %s845_s15, 3  ;;  %s633_s28 = sshll.u32 %s137_s26, 3 }
  0x10   : > { %s146_s4 = scalar_lea.hbm %s1056_s0, %s671_s27  ;;  %s141_s6 = scalar_lea.vmem [#allocation3], %s633_s28 }
  0x11   : > { %s148_s5 = sshll.u32 %s146_s4, 4  ;;  %s150_s7 = sshll.u32 %s141_s6, 4  ;;  %s149_s5 = int_to_ptr.hbm [resolvable:$true] %s148_s5  ;;  %s151_s7 = int_to_ptr.vmem [resolvable:$true] %s150_s7 }
  0x12   : > { %p941_p13 = pnand %p692_p10, %p915_p5  ;;  %p636_p0 = scmp.ge.s32.totalorder %s845_s15, 1 }
  0x13   : > { %p155_p1 = scmp.lt.s32.totalorder %s845_s15, 3  ;;  %s138_s9 = scalar_lea.sflag [#allocation4], %s137_s26 }
  0x14   : > { %s749_s10 = sshra.s32 %s149_s5, 4  ;;  %p753_p3 = pneg %p941_p13  ;;  %s750_s10 = int_to_ptr.hbm [resolvable:$true] %s749_s10 }
  0x15   : > { %s751_s11 = scalar_lea.hbm %s750_s10, 8  ;;  %s756_s20 = scalar_lea.hbm %s1056_s0, 16 }
  0x16   : > { %p752_p2 = scmp.ne.s32.totalorder %s750_s10, %s751_s11  ;;  %p757_p5 = scmp.lt.s32.totalorder %s750_s10, %s1056_s0 }
  0x17   : > { %p758_p8 = scmp.lt.s32.totalorder %s756_s20, %s751_s11 }
  0x18   : > { %p754_p4 = pnand %p753_p3, %p752_p2 }
  0x19   : > { %p759_p10 = por %p758_p8, %p757_p5 }
  0x1a   : > { %p755_p7 = pneg %p754_p4 }
  0x1c   : > { %p760_p9 = pnand %p759_p10, %p755_p7 }
  0x1e   : > { %763 = shalt.err (!%p760_p9)
}
  0x1f   : > { %687 = dma.hbm_to_vmem [thread:$0]  (!%p941_p13), %s149_s5, 128, %s151_s7, %s138_s9  }
  0x20   : > { %p156_p2 = pnand %p636_p0, %p155_p1 }
  0x21   : > { %s962_s26 = sand.u32 (!%p156_p2), 1, %s837_s13  }
  0x22   : > { %159 = sbr.rel (%p156_p2) target bundleno = 432 (0x1b0), region = 32  ;;  %s637_s28 = sshll.u32 (!%p156_p2), %s962_s26, 3 }
  0x23   : > { %s162_s29 = scalar_lea.sflag (!%p156_p2), [#allocation4], %s962_s26  ;;  %s165_s30 = scalar_lea.vmem (!%p156_p2), [#allocation3], %s637_s28 }
  0x27   : > { %824 = dma.done.wait (%p919_p6), %s162_s29, 128  }
  0x28   : > { %826 = vsyncadd (%p919_p6), %s162_s29, 4294967168  ;;  %v190_v0 = vld [vmem:[%s165_s30] sm:$0x3f]  ;;  %s847_s4 = smov 127   ;;  %s848_s5 = smov 126   ;;  %vm258_vm0 = vcmask 900096  }
  0x29   : > { %192 = vst [vmem:[#allocation1] ss:$2 sm:$0xff] %v190_v0  ;;  %v199_v1 = vld [vmem:[%s165_s30] sm:$0xff]  ;;  %s849_s23 = smov 110   ;;  %s850_s6 = smov 109   ;;  %vm215_vm1 = vcmask 1039360  }
  0x2a   : > { %s851_s7 = smov 108   ;;  %s852_s8 = smov 92   ;;  %vm236_vm2 = vcmask 1031168   ;;  %vm322_vm3 = vcmask 752640   ;;  %vm344_vm4 = vcmask 744448   ;;  %vm213_vm5 = vcmask 1043456  }
  0x2b   : > { %s853_s9 = smov 91   ;;  %s854_s10 = smov 90   ;;  %vm279_vm6 = vcmask 891904   ;;  %vm301_vm7 = vcmask 883712   ;;  %vm365_vm8 = vcmask 736256   ;;  %vm433_vm9 = vcmask 1041408  }
  0x2c   : > { %vm429_vm10 = vcmask 293888   ;;  %s678_s22 = smul.u32 12, %s962_s26 }
  0x2d   : > { %s679_s27 = smul.u32 12, %s897_s16 }
  0x2e   : > { %s188_s28 = scalar_lea.vmem [#allocation6], %s678_s22 }
  0x2f   : > { %s557_s16 = sshll.u32 %s188_s28, 4  ;;  %s558_s16 = int_to_ptr.vmem [resolvable:$true] %s557_s16 }
  0x30   : > { %v193_v2 = vld.sshfl [vmem:[#allocation1] sm:$0xff pattern:$0x75643120]  ;;  %v194_v3 = vld.sshfl [vmem:[#allocation1 + $0x8] sm:$0xff pattern:$0x75643120] }
  0x31   : > { %202 = vst [vmem:[#allocation1 + $0x1] ss:$2 sm:$0xff] %v199_v1 }
  0x32   : > { %197 = vst [vmem:[#allocation2] sm:$0x33] %v193_v2  ;;  %v383_v2 = vld [vmem:[%s1058_s2] sm:$0xff] }
  0x33   : > { %198 = vst [vmem:[#allocation2 + $0x8] sm:$0x3] %v194_v3 }
  0x38   : > { %v203_v4 = vld.sshfl [vmem:[#allocation1] sm:$0xff pattern:$0x75643120]  ;;  %v205_v5 = vld.sshfl [vmem:[#allocation1 + $0x8] sm:$0xff pattern:$0x75643120] }
  0x39   : > { %224 = vst [vmem:[#allocation1] ss:$2 sm:$0xff] %v199_v1  ;;  %209 = vrot.lane.b32.xlu0 %v205_v5, %s847_s4  ;;  %v855_v5 = vmov 0  }
  0x3a   : > { %735 = vset.pattern.permute.xlu1 %v855_v5  ;;  %736 = vset.pattern.permute.xlu0 %v855_v5 }
  0x40   : > { %v227_v6 = vld.sshfl [vmem:[#allocation1 + $0x8] sm:$0xff pattern:$0x75643120]  ;;  %v225_v7 = vld.sshfl [vmem:[#allocation1] sm:$0xff pattern:$0x75643120] }
  0x41   : > { %231 = vrot.lane.b32.xlu1 %v227_v6, %s848_s5  ;;  %246 = vst [vmem:[#allocation1 + $0x1] ss:$2 sm:$0xff] %v199_v1 }
  0x48   : > { %v247_v8 = vld.sshfl [vmem:[#allocation1] sm:$0xff pattern:$0x75643120]  ;;  %v249_v9 = vld.sshfl [vmem:[#allocation1 + $0x8] sm:$0xff pattern:$0x75643120] }
  0x49   : > { %267 = vst [vmem:[#allocation1] ss:$2 sm:$0xff] %v199_v1  ;;  %253 = vrot.lane.b32.xlu2 %v249_v9, %s849_s23 }
  0x50   : > { %v270_v10 = vld.sshfl [vmem:[#allocation1 + $0x8] sm:$0xff pattern:$0x75643120]  ;;  %v268_v11 = vld.sshfl [vmem:[#allocation1] sm:$0xff pattern:$0x75643120] }
  0x51   : > { %274 = vrot.lane.b32.xlu1 %v270_v10, %s850_s6  ;;  %289 = vst [vmem:[#allocation1 + $0x1] ss:$2 sm:$0xff] %v199_v1  ;;  %272 = vrot.lane.b32.xlu0 %v268_v11, %s850_s6 }
  0x58   : > { %v292_v12 = vld.sshfl [vmem:[#allocation1 + $0x8] sm:$0xff pattern:$0x75643120]  ;;  %v290_v13 = vld.sshfl [vmem:[#allocation1] sm:$0xff pattern:$0x75643120] }
  0x59   : > { %296 = vrot.lane.b32.xlu1 %v292_v12, %s851_s7  ;;  %310 = vst [vmem:[#allocation1] ss:$2 sm:$0xff] %v199_v1 }
  0x60   : > { %v313_v14 = vld.sshfl [vmem:[#allocation1 + $0x8] sm:$0xff pattern:$0x75643120]  ;;  %v311_v15 = vld.sshfl [vmem:[#allocation1] sm:$0xff pattern:$0x75643120] }
  0x61   : > { %294 = vrot.lane.b32.xlu1 %v290_v13, %s851_s7  ;;  %317 = vrot.lane.b32.xlu2 %v313_v14, %s852_s8  ;;  %332 = vst [vmem:[#allocation1 + $0x1] ss:$2 sm:$0xff] %v199_v1 }
  0x68   : > { %v333_v16 = vld.sshfl [vmem:[#allocation1] sm:$0xff pattern:$0x75643120]  ;;  %v335_v17 = vld.sshfl [vmem:[#allocation1 + $0x8] sm:$0xff pattern:$0x75643120] }
  0x69   : > { %207 = vrot.lane.b32.xlu1 %v203_v4, %s847_s4  ;;  %339 = vrot.lane.b32.xlu2 %v335_v17, %s853_s9  ;;  %353 = vst [vmem:[#allocation1] ss:$2 sm:$0xff] %v199_v1  ;;  %s555_s4 = scalar_lea.hbm %s1059_s3, %s679_s27 }
  0x70   : > { %v356_v18 = vld.sshfl [vmem:[#allocation1 + $0x8] sm:$0xff pattern:$0x75643120]  ;;  %v354_v19 = vld.sshfl [vmem:[#allocation1] sm:$0xff pattern:$0x75643120] }
  0x71   : > { %360 = vrot.lane.b32.xlu0 %v356_v18, %s854_s10  ;;  %315 = vrot.lane.b32.xlu2 %v311_v15, %s852_s8 }
  0x72   : > { %386 = vperm.xlu1 %735, %v383_v2  }
  0x79   : > { %358 = vrot.lane.b32.xlu0 %v354_v19, %s854_s10  ;;  %229 = vrot.lane.b32.xlu2 %v225_v7, %s848_s5  ;;  %s559_s5 = sshll.u32 %s555_s4, 4  ;;  %s799_s10 = scalar_lea.hbm %s1059_s3, 24  ;;  %s560_s5 = int_to_ptr.hbm [resolvable:$true] %s559_s5 }
  0x7a   : > { %s793_s6 = sshra.s32 %s560_s5, 4  ;;  %s794_s6 = int_to_ptr.hbm [resolvable:$true] %s793_s6 }
  0x7b   : > { %s795_s7 = scalar_lea.hbm %s794_s6, 12  ;;  %p800_p0 = scmp.lt.s32.totalorder %s794_s6, %s1059_s3 }
  0x7c   : > { %p796_p6 = scmp.ne.s32.totalorder %s794_s6, %s795_s7  ;;  %p801_p1 = scmp.lt.s32.totalorder %s799_s10, %s795_s7 }
  0x7e   : > { %p797_p9 = pnand %p796_p6, %p926_p11  ;;  %p802_p3 = por %p801_p1, %p800_p0 }
  0x80   : > { %p798_p13 = pneg %p797_p9 }
  0x81   : > { %337 = vrot.lane.b32.xlu0 %v333_v16, %s853_s9 }
  0x82   : > { %p803_p4 = pnand %p802_p3, %p798_p13 }
  0x89   : > { %251 = vrot.lane.b32.xlu0 %v247_v8, %s849_s23  ;;  %s544_s23 = scalar_lea.sflag [#allocation5], %s962_s26 }
  0xa3   : > { %v976_v20 = vpop.permute.xlu2 %253 }
  0xa4   : > { %v256_v21 = vrot.slane %v976_v20, 4 }
  0xa6   : > { %v260_v22 = vsel %vm258_vm0, %v976_v20, %v256_v21 }
  0xa7   : > { %264 = vst [vmem:[#allocation2 + $0x14] sm:$0xc] %v260_v22 }
  0xab   : > { %v210_v23 = vpop.permute.xlu0 %209 }
  0xac   : > { %v212_v24 = vrot.slane %v210_v23, 4 }
  0xae   : > { %v217_v25 = vsel %vm215_vm1, %v210_v23, %v212_v24 }
  0xaf   : > { %221 = vst [vmem:[#allocation2 + $0x8] sm:$0xc] %v217_v25 }
  0xb3   : > { %v232_v26 = vpop.permute.xlu1 %231 }
  0xb4   : > { %v234_v27 = vrot.slane %v232_v26, 4 }
  0xb6   : > { %v238_v28 = vsel %vm236_vm2, %v232_v26, %v234_v27  ;;  %v648_v17 = vld [vmem:[#allocation2 + $0x8] sm:$0xf] }
  0xb7   : > { %242 = vst [vmem:[#allocation2 + $0x14] sm:$0x3] %v238_v28 }
  0xbb   : > { %v318_v29 = vpop.permute.xlu2 %317 }
  0xbc   : > { %v320_v30 = vrot.slane %v318_v29, 4 }
  0xbe   : > { %v324_v31 = vsel %vm322_vm3, %v318_v29, %v320_v30  ;;  %v674_v18 = vld [vmem:[#allocation2 + $0x10] sm:$0xf0] }
  0xbf   : > { %328 = vst [vmem:[#allocation2 + $0x2c] sm:$0x3] %v324_v31  ;;  %v372_v31 = vld [vmem:[%s1057_s1] sm:$0xf] }
  0xc3   : > { %v275_v32 = vpop.permute.xlu1 %274  ;;  %v986_v33 = vpop.permute.xlu2 %339 }
  0xc4   : > { %v277_v34 = vrot.slane %v275_v32, 4  ;;  %v342_v35 = vrot.slane %v986_v33, 4  ;;  %v273_v36 = vpop.permute.xlu0 %272 }
  0xc5   : > { %v276_v37 = vrot.slane %v273_v36, 4 }
  0xc6   : > { %v281_v38 = vsel %vm279_vm6, %v275_v32, %v277_v34  ;;  %v346_v39 = vsel %vm344_vm4, %v986_v33, %v342_v35 }
  0xc7   : > { %285 = vst [vmem:[#allocation2 + $0x20] sm:$0x3] %v281_v38  ;;  %v278_v40 = vsel %vm213_vm5, %v276_v37, %v277_v34 }
  0xc8   : > { %350 = vst [vmem:[#allocation2 + $0x2c] sm:$0xc] %v346_v39  ;;  %v280_v41 = vsel %vm279_vm6, %v273_v36, %v278_v40 }
  0xc9   : > { %284 = vst [vmem:[#allocation2 + $0x18] sm:$0x33] %v280_v41 }
  0xcb   : > { %v297_v42 = vpop.permute.xlu1 %296  ;;  %v316_v43 = vpop.permute.xlu2 %315 }
  0xcc   : > { %v299_v44 = vrot.slane %v297_v42, 4  ;;  %v319_v45 = vrot.slane %v316_v43, 4 }
  0xce   : > { %v303_v46 = vsel %vm301_vm7, %v297_v42, %v299_v44  ;;  %v321_v47 = vsel %vm213_vm5, %v319_v45, %v320_v30 }
  0xcf   : > { %307 = vst [vmem:[#allocation2 + $0x20] sm:$0xc] %v303_v46  ;;  %v323_v48 = vsel %vm322_vm3, %v316_v43, %v321_v47  ;;  %v677_v12 = vld [vmem:[#allocation2 + $0x28] sm:$0xf0] }
  0xd0   : > { %327 = vst [vmem:[#allocation2 + $0x24] sm:$0x33] %v323_v48 }
  0xd3   : > { %v295_v49 = vpop.permute.xlu1 %294  ;;  %v230_v50 = vpop.permute.xlu2 %229 }
  0xd4   : > { %v298_v51 = vrot.slane %v295_v49, 4  ;;  %v233_v52 = vrot.slane %v230_v50, 4 }
  0xd6   : > { %v300_v53 = vsel %vm213_vm5, %v298_v51, %v299_v44  ;;  %v235_v54 = vsel %vm213_vm5, %v233_v52, %v234_v27  ;;  %v660_v11 = vld [vmem:[#allocation2 + $0x20] sm:$0xf] }
  0xd7   : > { %v302_v55 = vsel %vm301_vm7, %v295_v49, %v300_v53  ;;  %v237_v56 = vsel %vm236_vm2, %v230_v50, %v235_v54  ;;  %v661_v15 = vor.u32 %v677_v12, %v660_v11 }
  0xd8   : > { %306 = vst [vmem:[#allocation2 + $0x18] sm:$0xcc] %v302_v55 }
  0xd9   : > { %241 = vst [vmem:[#allocation2 + $0xc] sm:$0x33] %v237_v56 }
  0xdb   : > { %v208_v57 = vpop.permute.xlu1 %207 }
  0xdc   : > { %v211_v58 = vrot.slane %v208_v57, 4 }
  0xde   : > { %v214_v59 = vsel %vm213_vm5, %v211_v58, %v212_v24  ;;  %v649_v24 = vor.u32 %v674_v18, %v648_v17 }
  0xdf   : > { %v216_v60 = vsel %vm215_vm1, %v208_v57, %v214_v59  ;;  %v652_v33 = vld [vmem:[#allocation2 + $0x18] sm:$0xf]  ;;  %v675_v36 = vld [vmem:[#allocation2 + $0x1c] sm:$0xf] }
  0xe0   : > { %220 = vst [vmem:[#allocation2] sm:$0xcc] %v216_v60 }
  0xe3   : > { %v361_v61 = vpop.permute.xlu0 %360 }
  0xe4   : > { %v363_v62 = vrot.slane %v361_v61, 4 }
  0xe6   : > { %v367_v63 = vsel %vm365_vm8, %v361_v61, %v363_v62 }
  0xe7   : > { %371 = vst [vmem:[#allocation2 + $0x38] sm:$0x3] %v367_v63  ;;  %v640_v40 = vld [vmem:[#allocation2] sm:$0xf]  ;;  %v672_v42 = vld [vmem:[#allocation2 + $0x4] sm:$0xf] }
  0xeb   : > { %v359_v0 = vpop.permute.xlu0 %358 }
  0xec   : > { %v362_v1 = vrot.slane %v359_v0, 4 }
  0xee   : > { %v364_v3 = vsel %vm213_vm5, %v362_v1, %v363_v62  ;;  %v382_v4 = vld [vmem:[#allocation2 + $0x38] sm:$0x3] }
  0xef   : > { %v366_v6 = vsel %vm365_vm8, %v359_v0, %v364_v3  ;;  %v413_v7 = vunpack.c.l.b16 %v382_v4 }
  0xf0   : > { %370 = vst [vmem:[#allocation2 + $0x30] sm:$0x33] %v366_v6 }
  0xf1   : > { %v422_v8 = vpack.c.b16 %v413_v7, %v413_v7 }
  0xf3   : > { %v338_v9 = vpop.permute.xlu0 %337  ;;  %v441_v10 = vsel %vm433_vm9, %v422_v8, 0 }
  0xf4   : > { %v341_v13 = vrot.slane %v338_v9, 4  ;;  %474 = vmatpush.bf16.msra.mxu2 %v441_v10 }
  0xf6   : > { %v343_v14 = vsel %vm213_vm5, %v341_v13, %v342_v35 }
  0xf7   : > { %v345_v16 = vsel %vm344_vm4, %v338_v9, %v343_v14  ;;  %v381_v19 = vld [vmem:[#allocation2 + $0x30] sm:$0x33] }
  0xf8   : > { %349 = vst [vmem:[#allocation2 + $0x24] sm:$0xcc] %v345_v16  ;;  %475 = vmatpush.bf16.msra.mxu2 %v661_v15  ;;  %v411_v22 = vunpack.c.l.b16 %v381_v19  ;;  %v412_v23 = vunpack.c.h.b16 %v381_v19 }
  0xfa   : > { %v420_v25 = vpack.c.b16 %v411_v22, %v411_v22  ;;  %v421_v26 = vpack.c.b16 %v412_v23, %v412_v23 }
  0xfb   : > { %v252_v27 = vpop.permute.xlu0 %251 }
  0xfc   : > { %v255_v28 = vrot.slane %v252_v27, 4  ;;  %476 = vmatpush.bf16.msra.mxu2 %v649_v24  ;;  %v435_v29 = vsel %vm433_vm9, %v420_v25, 0  ;;  %v438_v30 = vsel %vm433_vm9, %v421_v26, 0 }
  0xfd   : > { %448 = vmatpush.bf16.msra.mxu0 %v435_v29  ;;  %461 = vmatpush.bf16.msra.mxu1 %v438_v30 }
  0xfe   : > { %v257_v32 = vsel %vm213_vm5, %v255_v28, %v256_v21  ;;  %v387_v21 = vpop.permute.xlu1 %386 }
  0xff   : > { %v259_v34 = vsel %vm258_vm0, %v252_v27, %v257_v32  ;;  %664 = vmatmul.msk.bf16.vlgmr.msra.gmra.mxu2 %vm429_vm10, %v372_v31  ;;  %v676_v35 = vld [vmem:[#allocation2 + $0x20] sm:$0xf0]  ;;  %v654_v37 = vld [vmem:[#allocation2 + $0x24] sm:$0xf0] }
 0x100   : > { %263 = vst [vmem:[#allocation2 + $0xc] sm:$0xcc] %v259_v34  ;;  %v653_v38 = vor.u32 %v676_v35, %v652_v33  ;;  %v657_v39 = vor.u32 %v675_v36, %v654_v37 }
 0x102   : > { %449 = vmatpush.bf16.msra.mxu0 %v653_v38  ;;  %462 = vmatpush.bf16.msra.mxu1 %v657_v39 }
 0x107   : > { %v673_v41 = vld [vmem:[#allocation2 + $0x8] sm:$0xf0]  ;;  %v642_v43 = vld [vmem:[#allocation2 + $0xc] sm:$0xf0] }
 0x108   : > { %v641_v20 = vor.u32 %v673_v41, %v640_v40  ;;  %v645_v44 = vor.u32 %v672_v42, %v642_v43 }
 0x10a   : > { %450 = vmatpush.bf16.msra.mxu0 %v641_v20  ;;  %463 = vmatpush.bf16.msra.mxu1 %v645_v44 }
 0x10d   : > { %662 = vmatmul.msk.bf16.vlgmr.msra.gmra.mxu0 %vm429_vm10, %v372_v31  ;;  %663 = vmatmul.msk.bf16.vlgmr.msra.gmra.mxu1 %vm429_vm10, %v372_v31 }
 0x182   : > { %v478_v45 = vpop.f32.mrf.mxu2 }
 0x183   : > { %v479_v46 = vadd.f32 %v478_v45, %v387_v21 }
 0x185   : > { %v667_v47 = vmul.f32 -1.442695, %v479_v46 }
 0x187   : > { %737 = vpow2.f32 %v667_v47 }
 0x18a   : > { %v452_v48 = vpop.f32.mrf.mxu0  ;;  %v465_v49 = vpop.f32.mrf.mxu1 }
 0x18b   : > { %v453_v50 = vadd.f32 %v452_v48, %v387_v21  ;;  %v466_v51 = vadd.f32 %v465_v49, %v387_v21  ;;  %v480_v52 = vpop.f32.mrf.mxu2 }
 0x18d   : > { %v738_v53 = vpop.eup %737  ;;  %v665_v54 = vmul.f32 -1.442695, %v453_v50  ;;  %v666_v55 = vmul.f32 -1.442695, %v466_v51 }
 0x18e   : > { %v493_v56 = vadd.f32 1.0, %v738_v53 }
 0x18f   : > { %739 = vpow2.f32 %v665_v54 }
 0x190   : > { %741 = vrcp.f32 %v493_v56  ;;  %vm529_vm11 = vweird.f32 %v493_v56  ;;  %v535_v2 = vand.u32 2147483648, %v493_v56  ;;  %v533_v4 = vand.u32 2147483647, %v493_v56 }
 0x191   : > { %743 = vpow2.f32 %v666_v55 }
 0x192   : > { %v454_v57 = vpop.f32.mrf.mxu0  ;;  %v467_v58 = vpop.f32.mrf.mxu1  ;;  %v536_v7 = vor.u32 1.1754944e-38, %v535_v2  ;;  %vm534_vm14 = vcmp.eq.f32.partialorder %v533_v4, 8.507059e+37 }
 0x195   : > { %v740_v59 = vpop.eup %739 }
 0x196   : > { %v742_v60 = vpop.eup %741  ;;  %v491_v61 = vadd.f32 1.0, %v740_v59 }
 0x197   : > { %v744_v62 = vpop.eup %743  ;;  %v525_v63 = vmul.f32 %v742_v60, %v493_v56  ;;  %vm530_vm12 = vweird.f32 %v742_v60 }
 0x198   : > { %745 = vrcp.f32 %v491_v61  ;;  %v492_v1 = vadd.f32 1.0, %v744_v62  ;;  %vm531_vm13 = vmor %vm529_vm11, %vm530_vm12  ;;  %v505_v16 = vand.u32 2147483648, %v491_v61  ;;  %v503_v17 = vand.u32 2147483647, %v491_v61 }
 0x199   : > { %v526_v0 = vsub.f32 1.0, %v525_v63  ;;  %vm499_vm0 = vweird.f32 %v491_v61 }
 0x19a   : > { %747 = vrcp.f32 %v492_v1  ;;  %v520_v22 = vand.u32 2147483648, %v492_v1  ;;  %v518_v24 = vand.u32 2147483647, %v492_v1  ;;  %v506_v25 = vor.u32 1.1754944e-38, %v505_v16 }
 0x19b   : > { %v527_v3 = vmul.f32 %v742_v60, %v526_v0  ;;  %vm514_vm3 = vweird.f32 %v492_v1  ;;  %vm504_vm4 = vcmp.eq.f32.partialorder %v503_v17, 8.507059e+37 }
 0x19c   : > { %v521_v28 = vor.u32 1.1754944e-38, %v520_v22  ;;  %vm519_vm6 = vcmp.eq.f32.partialorder %v518_v24, 8.507059e+37 }
 0x19d   : > { %v528_v5 = vadd.f32 %v742_v60, %v527_v3 }
 0x19e   : > { %v746_v6 = vpop.eup %745 }
 0x19f   : > { %v495_v8 = vmul.f32 %v746_v6, %v491_v61  ;;  %v532_v9 = vsel %vm531_vm13, %v742_v60, %v528_v5  ;;  %vm500_vm15 = vweird.f32 %v746_v6 }
 0x1a0   : > { %v537_v10 = vsel %vm534_vm14, %v536_v7, %v532_v9  ;;  %v748_v11 = vpop.eup %747  ;;  %vm501_vm1 = vmor %vm499_vm0, %vm500_vm15 }
 0x1a1   : > { %v496_v12 = vsub.f32 1.0, %v495_v8  ;;  %v540_v13 = vpack.c.bf16 %v537_v10, %v537_v10  ;;  %v510_v14 = vmul.f32 %v748_v11, %v492_v1  ;;  %vm515_vm2 = vweird.f32 %v748_v11 }
 0x1a2   : > { %vm516_vm5 = vmor %vm514_vm3, %vm515_vm2 }
 0x1a3   : > { %v497_v15 = vmul.f32 %v746_v6, %v496_v12  ;;  %542 = vst [vmem:[%s188_s28 + $0x8] sm:$0xf] %v540_v13  ;;  %v511_v18 = vsub.f32 1.0, %v510_v14 }
 0x1a5   : > { %v498_v19 = vadd.f32 %v746_v6, %v497_v15  ;;  %v512_v23 = vmul.f32 %v748_v11, %v511_v18 }
 0x1a7   : > { %v502_v26 = vsel %vm501_vm1, %v746_v6, %v498_v19  ;;  %v513_v27 = vadd.f32 %v748_v11, %v512_v23 }
 0x1a8   : > { %v507_v29 = vsel %vm504_vm4, %v506_v25, %v502_v26 }
 0x1a9   : > { %v517_v30 = vsel %vm516_vm5, %v748_v11, %v513_v27 }
 0x1aa   : > { %v522_v31 = vsel %vm519_vm6, %v521_v28, %v517_v30 }
 0x1ab   : > { %v539_v32 = vpack.c.bf16 %v522_v31, %v507_v29 }
 0x1ad   : > { %541 = vst [vmem:[%s188_s28] sm:$0xff] %v539_v32 }
 0x1ae   : > { %806 = shalt.err (!%p803_p4)
}
 0x1af   : > { %682 = dma.vmem_to_hbm [thread:$0]  (%p926_p11), %s558_s16, 192, %s560_s5, %s544_s23  }
 0x1b0 PF: > { %s571_s26 = sand.u32 1, %s833_s12   ;;  %p1065_p7 = scmp.ge.s32.totalorder %s845_s15, 2 }
 0x1b1   : > { %s572_s19 = scalar_lea.sflag [#allocation5], %s571_s26 }
 0x1b2   : > { %p689_p5 = pnand %p1065_p7, %p930_p12 }
 0x1b4   : > { %p690_p8 = pneg %p689_p5 }
 0x1b6   : > { %828 = dma.done.wait (%p690_p8), %s572_s19, 192  }
 0x1b7   : > { %830 = vsyncadd (%p690_p8), %s572_s19, 4294967104  ;;  %p16_p10 = scmp.ge.s32.totalorder %s901_s18, 4   ;;  %s1066_s12 = smov %s837_s13 }
 0x1b8   : > { %s1067_s13 = smov %s841_s14  ;;  %s1068_s14 = smov %s913_s21 }
 0x1b9   : > { %s1069_s15 = smov %s901_s18  ;;  %18 = sbr.rel (!%p16_p10) target bundleno = 5 (0x5), region = 81 }
 0x1be   :  { %578 = vsyncpa [#allocation4], 1 }
 0x1bf   :  { %580 = vsyncpa [#allocation4 + $0x1], 1 }
 0x1c0   :  { %581 = vsyncpa [#allocation5], 1 }
 0x1c1   :  { %583 = vsyncpa [#allocation5 + $0x1], 1 }

</bundles_post_ra>
